<compile_context>
chip_gen: v7x
topology: tpu7x:2x2x1
jax: 0.10.0
libtpu: 0.0.40
codegen_flags: <defaults>
</compile_context>

<pallas_src>
import functools

import jax
import jax.numpy as jnp
from jax.experimental import pallas as pl
from jax.experimental.pallas import tpu as pltpu


# -----------------------------------------------------------------------------
# Hardware-aware tiling parameters
# -----------------------------------------------------------------------------
def _tpu_generation():
    """Best-effort TPU generation tag ('v5', 'v6', 'v7') or None."""
    try:
        kind = jax.devices()[0].device_kind.lower()
    except Exception:
        return None
    for tag in ("v7", "v6", "v5"):
        if tag in kind:
            return tag
    return None


def _hw_params():
    gen = _tpu_generation()
    if gen == "v7":
        # 64 MiB VMEM, 2 TensorCores/chip -> smaller tiles, split small batches
        # so both TCs get work on the 'parallel' grid axis.
        return dict(gen=gen, budget=24 << 20, vmem_limit=40 << 20,
                    max_tile=1024, single_block_max=128)
    if gen in ("v5", "v6"):
        # 128 MiB VMEM -> larger streaming tiles are free (v5e scoped default is
        # only 16 MiB, so the explicit vmem_limit below is mandatory there).
        return dict(gen=gen, budget=48 << 20, vmem_limit=64 << 20,
                    max_tile=2048, single_block_max=256)
    # Unknown part: conservative.
    return dict(gen=gen, budget=24 << 20, vmem_limit=40 << 20,
                max_tile=1024, single_block_max=256)


# -----------------------------------------------------------------------------
# Kernels
# -----------------------------------------------------------------------------
def _average_fusion_kernel(*refs, acc_dtype):
    # refs: view_0 .. view_{V-1}  (each (TN, D)),  out (TN, D)
    out_ref = refs[-1]
    views = refs[:-1]
    V = len(views)
    acc = views[0][...].astype(acc_dtype)
    for v in range(1, V):                      # V small & static -> unrolled
        acc = acc + views[v][...].astype(acc_dtype)
    out_ref[...] = (acc * (1.0 / V)).astype(out_ref.dtype)


def _weight_fusion_kernel(*refs, acc_dtype):
    # refs: w_smem (V,) softmaxed view weights in SMEM,
    #       view_0 .. view_{V-1} (each (TN, D)),  out (TN, D)
    w_ref = refs[0]
    out_ref = refs[-1]
    views = refs[1:-1]
    acc = w_ref[0].astype(acc_dtype) * views[0][...].astype(acc_dtype)
    for v in range(1, len(views)):
        acc = acc + w_ref[v].astype(acc_dtype) * views[v][...].astype(acc_dtype)
    out_ref[...] = acc.astype(out_ref.dtype)


def _attention_fusion_kernel(*refs, mxu_dtype, batched):
    # refs: view_0 .. view_{V-1} (each (TN, D)),
    #       w1 (D, H), b1 (1, H), w2 (H, 32), w3 (1, 32), out (TN, D)
    out_ref = refs[-1]
    w1_ref, b1_ref, w2_ref, w3_ref = refs[-5:-1]
    view_refs = refs[:-5]
    V = len(view_refs)
    TN = view_refs[0].shape[0]

    w1 = w1_ref[...].astype(mxu_dtype)
    w2 = w2_ref[...].astype(mxu_dtype)
    b1 = b1_ref[...]                     # (1, H)  f32
    w3 = w3_ref[...]                     # (1, 32) f32

    def mlp_score(x):
        # x: (M, D) in mxu_dtype.  Returns (M, 1) f32 attention logits.
        h = jnp.tanh(jnp.dot(x, w1, preferred_element_type=jnp.float32) + b1)
        h2 = jnp.tanh(jnp.dot(h.astype(mxu_dtype), w2,
                              preferred_element_type=jnp.float32))
        # Linear(32 -> 1, bias=False): one cross-lane reduce.
        return jnp.sum(h2 * w3, axis=1, keepdims=True)

    if batched:
        # Tiny tiles: one MXU-filling dot over all views (M = V*TN).  The final
        # weighted sum reuses static slices of the same buffer, so the inputs
        # are not kept live twice.
        x = jnp.concatenate([r[...] for r in view_refs], axis=0)     # (V*TN, D)
        s = mlp_score(x.astype(mxu_dtype))                           # (V*TN, 1)
        scores = [s[v * TN:(v + 1) * TN] for v in range(V)]          # static slices
        views = [x[v * TN:(v + 1) * TN] for v in range(V)]
    else:
        # Large tiles: (TN, D) already fills the MXU M-dimension; per-view dots
        # avoid the (V*TN, D) VMEM concat copy entirely.
        views = [r[...] for r in view_refs]
        scores = [mlp_score(v.astype(mxu_dtype)) for v in views]

    m = scores[0]
    for v in range(1, V):
        m = jnp.maximum(m, scores[v])
    exps = [jnp.exp(sc - m) for sc in scores]
    denom = exps[0]
    for v in range(1, V):
        denom = denom + exps[v]
    inv = pl.reciprocal(denom, approx=True)          # EUP slot
    inv = inv * (2.0 - denom * inv)                  # one NR step -> ~f32 accuracy

    acc = (exps[0] * inv) * views[0].astype(jnp.float32)
    for v in range(1, V):
        acc = acc + (exps[v] * inv) * views[v].astype(jnp.float32)
    out_ref[...] = acc.astype(out_ref.dtype)


# -----------------------------------------------------------------------------
# Tile selection / wrapper
# -----------------------------------------------------------------------------
def _choose_tile_n(N, V, D, dtype, *, attention=False, hidden_size=64, hw=None):
    """Largest batch tile that fits a double-buffered VMEM budget.

    Small batches run as a single full-N block; large batches keep >= 2 grid
    steps.  Ragged N is handled with pl.cdiv + a padded last block, so the
    chosen tile does NOT have to divide N.
    """
    hw = hw or _hw_params()
    itemsize = jnp.dtype(dtype).itemsize
    min_rows = 16 if itemsize < 4 else 8           # bf16 needs (16, 128) tiles
    if N <= hw["single_block_max"] or N <= min_rows:
        return N
    lane_d = max(-(-D // 128) * 128, 128)          # lane padding
    per_row = (V + 1) * lane_d * itemsize * 2      # dbl-buffered views + out
    if attention:
        # f32 intermediates held live per row (views, h, h2, scores).
        per_row += V * (lane_d + hidden_size + 32 + 8) * 4
    cap = max(min_rows, hw["budget"] // per_row)
    limit = min(cap, hw["max_tile"], max(min_rows, N // 2))
    candidates = [t for t in (2048, 1024, 512, 256, 128, 64, 32, 16)
                  if min_rows <= t <= limit]
    for t in candidates:            # prefer an exact divisor: no padded block
        if N % t == 0:
            return t
    if candidates:                  # ragged N: largest tile + cdiv grid
        return candidates[0]
    return N                        # degenerate (huge D): single full block


class FusionLayer:
    """JAX/Pallas port of the PyTorch FusionLayer."""

    def __init__(self, num_views, fusion_type, in_size, hidden_size=64, key=None):
        self.num_views = num_views
        self.fusion_type = fusion_type
        self.in_size = in_size
        self.hidden_size = hidden_size
        if key is None:
            key = jax.random.PRNGKey(42)

        if fusion_type == "weight":
            # nn.Parameter(torch.ones(num_views) / num_views)
            self.view_weight = jnp.ones((num_views,), jnp.float32) / num_views

        if fusion_type == "attention":
            k1, k2, k3, k4 = jax.random.split(key, 4)
            # PyTorch Linear stores (out, in); we pre-transpose to (in, out).
            self.w1 = (jax.random.normal(k1, (in_size, hidden_size), jnp.float32)
                       * (1.0 / jnp.sqrt(in_size)))
            self.b1 = jax.random.normal(k2, (1, hidden_size), jnp.float32) * 0.01
            self.w2 = (jax.random.normal(k3, (hidden_size, 32), jnp.float32)
                       * (1.0 / jnp.sqrt(hidden_size)))
            self.w3 = (jax.random.normal(k4, (1, 32), jnp.float32)
                       * (1.0 / jnp.sqrt(32.0)))
            # bf16-native 256x256 MXU on v6e/v7x; keep f32 MXU passes on v5e.
            self.mxu_dtype = (jnp.bfloat16 if _hw_params()["gen"] in ("v6", "v7")
                              else jnp.float32)

    def __call__(self, emb_list, *, tile_n=None):
        V = len(emb_list)
        N, D = emb_list[0].shape
        dtype = emb_list[0].dtype
        hw = _hw_params()
        attention = self.fusion_type == "attention"

        if tile_n is None:
            tile_n = _choose_tile_n(N, V, D, dtype, attention=attention,
                                    hidden_size=self.hidden_size, hw=hw)
        tile_n = min(tile_n, N)
        grid = (pl.cdiv(N, tile_n),)          # ragged N -> padded last block

        # TODO(synk): a D that is not a multiple of 128 makes every output store
        # a masked vst.msk; pad D to 128 upstream if that shows up in traces.
        view_spec = pl.BlockSpec((tile_n, D), lambda i: (i, 0))
        out_spec = pl.BlockSpec((tile_n, D), lambda i: (i, 0))
        out_shape = jax.ShapeDtypeStruct((N, D), dtype)
        cparams = pltpu.CompilerParams(
            dimension_semantics=("parallel",),
            vmem_limit_bytes=hw["vmem_limit"],
        )

        # v6e/v7x VPUs are bf16-native: accumulate bf16 inputs in bf16 there;
        # always accumulate f32 on v5e / unknown parts.
        native_bf16 = hw["gen"] in ("v6", "v7")
        acc_dtype = dtype if (dtype == jnp.bfloat16 and native_bf16) else jnp.float32

        if self.fusion_type == "average":
            kernel = functools.partial(_average_fusion_kernel, acc_dtype=acc_dtype)
            return pl.pallas_call(
                kernel,
                out_shape=out_shape,
                grid=grid,
                in_specs=[view_spec] * V,
                out_specs=out_spec,
                compiler_params=cparams,
            )(*emb_list)

        elif self.fusion_type == "weight":
            # Softmax over the V learnable weights done once here; kernel reads
            # the V scalars from SMEM (no per-step softmax / cross-lane extract).
            w_soft = jax.nn.softmax(self.view_weight, axis=0)         # (V,)
            smem_spec = pl.BlockSpec(memory_space=pltpu.MemorySpace.SMEM)
            kernel = functools.partial(_weight_fusion_kernel, acc_dtype=acc_dtype)
            return pl.pallas_call(
                kernel,
                out_shape=out_shape,
                grid=grid,
                in_specs=[smem_spec] + [view_spec] * V,
                out_specs=out_spec,
                compiler_params=cparams,
            )(w_soft, *emb_list)

        elif self.fusion_type == "attention":
            H = self.hidden_size
            batched = tile_n < 256            # tiny tiles: batch views to fill MXU M
            kernel = functools.partial(_attention_fusion_kernel,
                                       mxu_dtype=self.mxu_dtype, batched=batched)
            full = lambda shape: pl.BlockSpec(shape, lambda i: (0, 0))
            return pl.pallas_call(
                kernel,
                out_shape=out_shape,
                grid=grid,
                in_specs=[view_spec] * V + [
                    full((D, H)),      # w1
                    full((1, H)),      # b1
                    full((H, 32)),     # w2
                    full((1, 32)),     # w3
                ],
                out_specs=out_spec,
                compiler_params=cparams,
            )(*emb_list, self.w1, self.b1, self.w2, self.w3)

        else:
            raise ValueError("Please using a correct fusion type")


# -----------------------------------------------------------------------------
# Pure-JAX references (for correctness checks)
# -----------------------------------------------------------------------------
def _average_ref(emb_list):
    return sum(emb_list) / len(emb_list)


def _weight_ref(emb_list, view_weight):
    w = jax.nn.softmax(view_weight.reshape(-1), axis=0)
    return sum(wv * e for e, wv in zip(emb_list, w))


def _attention_ref(emb_list, w1, b1, w2, w3, mxu_dtype=jnp.float32):
    emb = jnp.stack(emb_list, axis=1)                               # (N, V, D)
    h = jnp.tanh(jnp.einsum("nvd,dh->nvh", emb.astype(mxu_dtype),
                            w1.astype(mxu_dtype),
                            preferred_element_type=jnp.float32) + b1.reshape(-1))
    h2 = jnp.tanh(jnp.einsum("nvh,hk->nvk", h.astype(mxu_dtype),
                             w2.astype(mxu_dtype),
                             preferred_element_type=jnp.float32))
    s = jnp.einsum("nvk,k->nv", h2, w3.reshape(-1))[..., None]      # (N, V, 1)
    w = jax.nn.softmax(s, axis=1)
    return (w * emb).sum(axis=1)


# -----------------------------------------------------------------------------
# Main
# -----------------------------------------------------------------------------
if __name__ == "__main__":
    key = jax.random.PRNGKey(0)
    num_views, D, H = 3, 128, 64                 # D=128 -> lane-dense output

    # ---- attention fusion, small batch (batched-concat kernel path) ----
    N_small = 64
    keys = jax.random.split(key, num_views + 1)
    emb_small = [jax.random.normal(keys[v], (N_small, D), jnp.float32)
                 for v in range(num_views)]
    attn_layer = FusionLayer(num_views, "attention", D, H, key=keys[-1])
    out_attn = jax.block_until_ready(attn_layer(emb_small))
    ref_attn = _attention_ref(emb_small, attn_layer.w1, attn_layer.b1,
                              attn_layer.w2, attn_layer.w3,
                              mxu_dtype=attn_layer.mxu_dtype)
    tol = 1e-4 if attn_layer.mxu_dtype == jnp.float32 else 2e-3
    assert out_attn.shape == (N_small, D)
    assert jnp.allclose(out_attn, ref_attn, atol=tol, rtol=tol)

    # ---- attention fusion, larger batch (per-view-dot kernel path) ----
    N_big = 512
    kb = jax.random.split(jax.random.PRNGKey(1), num_views)
    emb_big = [jax.random.normal(kb[v], (N_big, D), jnp.float32)
               for v in range(num_views)]
    out_big = jax.block_until_ready(attn_layer(emb_big))
    ref_big = _attention_ref(emb_big, attn_layer.w1, attn_layer.b1,
                             attn_layer.w2, attn_layer.w3,
                             mxu_dtype=attn_layer.mxu_dtype)
    assert jnp.allclose(out_big, ref_big, atol=tol, rtol=tol)

    # ---- weight fusion ----
    w_layer = FusionLayer(num_views, "weight", D, H)
    out_w = jax.block_until_ready(w_layer(emb_small))
    assert jnp.allclose(out_w, _weight_ref(emb_small, w_layer.view_weight),
                        atol=1e-5, rtol=1e-5)

    # ---- average fusion, ragged batch (exercises cdiv + padded last block) ----
    N_ragged = 300
    kr = jax.random.split(jax.random.PRNGKey(2), num_views)
    emb_ragged = [jax.random.normal(kr[v], (N_ragged, D), jnp.float32)
                  for v in range(num_views)]
    avg_layer = FusionLayer(num_views, "average", D, H)
    out_avg = jax.block_until_ready(avg_layer(emb_ragged))
    assert out_avg.shape == (N_ragged, D)
    assert jnp.allclose(out_avg, _average_ref(emb_ragged), atol=1e-5, rtol=1e-5)

    print("KERNEL_OK")
</pallas_src>

<mosaic_0001>
module attributes {stable_mosaic.version = 11 : i64} {
  func.func @_attention_fusion_kernel(%arg0: i32, %arg1: memref<64x128xf32, #tpu.memory_space<vmem>>, %arg2: memref<64x128xf32, #tpu.memory_space<vmem>>, %arg3: memref<64x128xf32, #tpu.memory_space<vmem>>, %arg4: memref<128x64xf32, #tpu.memory_space<vmem>>, %arg5: memref<1x64xf32, #tpu.memory_space<vmem>>, %arg6: memref<64x32xf32, #tpu.memory_space<vmem>>, %arg7: memref<1x32xf32, #tpu.memory_space<vmem>>, %arg8: memref<64x128xf32, #tpu.memory_space<vmem>>) attributes {dimension_semantics = [#tpu.dimension_semantics<parallel>], iteration_bounds = array<i64: 1>, scalar_prefetch = 0 : i64, scratch_operands = 0 : i64, tpu.core_type = #tpu.core_type<tc>, window_params = [{transform_indices = @transform_0, window_bounds = array<i64: 64, 128>}, {transform_indices = @transform_1, window_bounds = array<i64: 64, 128>}, {transform_indices = @transform_2, window_bounds = array<i64: 64, 128>}, {pipeline_mode = #tpu.pipeline_mode<synchronous>, transform_indices = @transform_3, window_bounds = array<i64: 128, 64>}, {pipeline_mode = #tpu.pipeline_mode<synchronous>, transform_indices = @transform_4, window_bounds = array<i64: 1, 64>}, {pipeline_mode = #tpu.pipeline_mode<synchronous>, transform_indices = @transform_5, window_bounds = array<i64: 64, 32>}, {pipeline_mode = #tpu.pipeline_mode<synchronous>, transform_indices = @transform_6, window_bounds = array<i64: 1, 32>}, {transform_indices = @transform_7, window_bounds = array<i64: 64, 128>}]} {
    %c0 = arith.constant 0 : index
    %c0_0 = arith.constant 0 : index
    %0 = vector.load %arg4[%c0, %c0_0] : memref<128x64xf32, #tpu.memory_space<vmem>>, vector<128x64xf32>
    %c0_1 = arith.constant 0 : index
    %c0_2 = arith.constant 0 : index
    %1 = vector.load %arg6[%c0_1, %c0_2] : memref<64x32xf32, #tpu.memory_space<vmem>>, vector<64x32xf32>
    %c0_3 = arith.constant 0 : index
    %c0_4 = arith.constant 0 : index
    %2 = vector.load %arg5[%c0_3, %c0_4] : memref<1x64xf32, #tpu.memory_space<vmem>>, vector<1x64xf32>
    %c0_5 = arith.constant 0 : index
    %c0_6 = arith.constant 0 : index
    %3 = vector.load %arg7[%c0_5, %c0_6] : memref<1x32xf32, #tpu.memory_space<vmem>>, vector<1x32xf32>
    %c0_7 = arith.constant 0 : index
    %c0_8 = arith.constant 0 : index
    %4 = vector.load %arg1[%c0_7, %c0_8] : memref<64x128xf32, #tpu.memory_space<vmem>>, vector<64x128xf32>
    %c0_9 = arith.constant 0 : index
    %c0_10 = arith.constant 0 : index
    %5 = vector.load %arg2[%c0_9, %c0_10] : memref<64x128xf32, #tpu.memory_space<vmem>>, vector<64x128xf32>
    %c0_11 = arith.constant 0 : index
    %c0_12 = arith.constant 0 : index
    %6 = vector.load %arg3[%c0_11, %c0_12] : memref<64x128xf32, #tpu.memory_space<vmem>>, vector<64x128xf32>
    %7 = tpu.concatenate %4, %5, %6 in 0 : vector<64x128xf32>, vector<64x128xf32>, vector<64x128xf32> -> vector<192x128xf32>
    %cst = arith.constant dense<0.000000e+00> : vector<192x64xf32>
    %8 = tpu.matmul %7, %0, %cst {dimension_numbers = #tpu.dot_dimension_numbers<[1], [0], [0], [1], [0, 0, 1, 1], [], []>} : vector<192x128xf32>, vector<128x64xf32>, vector<192x64xf32> -> vector<192x64xf32>
    %9 = vector.broadcast %2 : vector<1x64xf32> to vector<192x64xf32>
    %10 = arith.addf %8, %9 : vector<192x64xf32>
    %11 = math.tanh %10 : vector<192x64xf32>
    %cst_13 = arith.constant dense<0.000000e+00> : vector<192x32xf32>
    %12 = tpu.matmul %11, %1, %cst_13 {dimension_numbers = #tpu.dot_dimension_numbers<[1], [0], [0], [1], [0, 0, 1, 1], [], []>} : vector<192x64xf32>, vector<64x32xf32>, vector<192x32xf32> -> vector<192x32xf32>
    %13 = math.tanh %12 : vector<192x32xf32>
    %14 = vector.broadcast %3 : vector<1x32xf32> to vector<192x32xf32>
    %15 = arith.mulf %13, %14 : vector<192x32xf32>
    %cst_14 = arith.constant dense<0.000000e+00> : vector<192xf32>
    %16 = vector.multi_reduction <add>, %15, %cst_14 [1] : vector<192x32xf32> to vector<192xf32>
    %17 = vector.shape_cast %16 : vector<192xf32> to vector<192x1xf32>
    %18 = vector.extract_strided_slice %17 {offsets = [0, 0], sizes = [64, 1], strides = [1, 1]} : vector<192x1xf32> to vector<64x1xf32>
    %19 = vector.extract_strided_slice %17 {offsets = [64, 0], sizes = [64, 1], strides = [1, 1]} : vector<192x1xf32> to vector<64x1xf32>
    %20 = vector.extract_strided_slice %17 {offsets = [128, 0], sizes = [64, 1], strides = [1, 1]} : vector<192x1xf32> to vector<64x1xf32>
    %21 = vector.extract_strided_slice %7 {offsets = [0, 0], sizes = [64, 128], strides = [1, 1]} : vector<192x128xf32> to vector<64x128xf32>
    %22 = vector.extract_strided_slice %7 {offsets = [64, 0], sizes = [64, 128], strides = [1, 1]} : vector<192x128xf32> to vector<64x128xf32>
    %23 = vector.extract_strided_slice %7 {offsets = [128, 0], sizes = [64, 128], strides = [1, 1]} : vector<192x128xf32> to vector<64x128xf32>
    %24 = arith.maximumf %18, %19 : vector<64x1xf32>
    %25 = arith.maximumf %24, %20 : vector<64x1xf32>
    %26 = arith.subf %18, %25 : vector<64x1xf32>
    %27 = math.exp %26 : vector<64x1xf32>
    %28 = arith.subf %19, %25 : vector<64x1xf32>
    %29 = math.exp %28 : vector<64x1xf32>
    %30 = arith.subf %20, %25 : vector<64x1xf32>
    %31 = math.exp %30 : vector<64x1xf32>
    %32 = arith.addf %27, %29 : vector<64x1xf32>
    %33 = arith.addf %32, %31 : vector<64x1xf32>
    %34 = tpu.reciprocal %33 {approx = true} : vector<64x1xf32> -> vector<64x1xf32>
    %35 = arith.mulf %33, %34 : vector<64x1xf32>
    %cst_15 = arith.constant 2.000000e+00 : f32
    %36 = vector.broadcast %cst_15 : f32 to vector<64x1xf32>
    %37 = arith.subf %36, %35 : vector<64x1xf32>
    %38 = arith.mulf %34, %37 : vector<64x1xf32>
    %39 = arith.mulf %27, %38 : vector<64x1xf32>
    %40 = vector.broadcast %39 : vector<64x1xf32> to vector<64x128xf32>
    %41 = arith.mulf %40, %21 : vector<64x128xf32>
    %42 = arith.mulf %29, %38 : vector<64x1xf32>
    %43 = vector.broadcast %42 : vector<64x1xf32> to vector<64x128xf32>
    %44 = arith.mulf %43, %22 : vector<64x128xf32>
    %45 = arith.addf %41, %44 : vector<64x128xf32>
    %46 = arith.mulf %31, %38 : vector<64x1xf32>
    %47 = vector.broadcast %46 : vector<64x1xf32> to vector<64x128xf32>
    %48 = arith.mulf %47, %23 : vector<64x128xf32>
    %49 = arith.addf %45, %48 : vector<64x128xf32>
    %c0_16 = arith.constant 0 : index
    %c0_17 = arith.constant 0 : index
    %50 = vector.load %arg8[%c0_16, %c0_17] : memref<64x128xf32, #tpu.memory_space<vmem>>, vector<64x128xf32>
    tpu.vector_store %arg8[%c0_16, %c0_17], %49 {strides = array<i32>} : memref<64x128xf32, #tpu.memory_space<vmem>>, vector<64x128xf32>,
    return
  }
  func.func @transform_0(%arg0: i32) -> (i32, i32) {
    %c0_i32 = arith.constant 0 : i32
    %c0_i32_0 = arith.constant 0 : i32
    return %arg0, %c0_i32 : i32, i32
  }
  func.func @transform_1(%arg0: i32) -> (i32, i32) {
    %c0_i32 = arith.constant 0 : i32
    %c0_i32_0 = arith.constant 0 : i32
    return %arg0, %c0_i32 : i32, i32
  }
  func.func @transform_2(%arg0: i32) -> (i32, i32) {
    %c0_i32 = arith.constant 0 : i32
    %c0_i32_0 = arith.constant 0 : i32
    return %arg0, %c0_i32 : i32, i32
  }
  func.func @transform_3(%arg0: i32) -> (i32, i32) {
    %c0_i32 = arith.constant 0 : i32
    %c0_i32_0 = arith.constant 0 : i32
    %c0_i32_1 = arith.constant 0 : i32
    return %c0_i32, %c0_i32_0 : i32, i32
  }
  func.func @transform_4(%arg0: i32) -> (i32, i32) {
    %c0_i32 = arith.constant 0 : i32
    %c0_i32_0 = arith.constant 0 : i32
    %c0_i32_1 = arith.constant 0 : i32
    return %c0_i32, %c0_i32_0 : i32, i32
  }
  func.func @transform_5(%arg0: i32) -> (i32, i32) {
    %c0_i32 = arith.constant 0 : i32
    %c0_i32_0 = arith.constant 0 : i32
    %c0_i32_1 = arith.constant 0 : i32
    return %c0_i32, %c0_i32_0 : i32, i32
  }
  func.func @transform_6(%arg0: i32) -> (i32, i32) {
    %c0_i32 = arith.constant 0 : i32
    %c0_i32_0 = arith.constant 0 : i32
    %c0_i32_1 = arith.constant 0 : i32
    return %c0_i32, %c0_i32_0 : i32, i32
  }
  func.func @transform_7(%arg0: i32) -> (i32, i32) {
    %c0_i32 = arith.constant 0 : i32
    %c0_i32_0 = arith.constant 0 : i32
    return %arg0, %c0_i32 : i32, i32
  }
}

</mosaic_0001>

<bundles_post_ra>
// kernel: tpu_custom_call.1
= control target key start
LH: loop header
LB: loop body
LE: loop exit
PB: predicated region body
PF: predicated region fallthrough
CT: control target
= control target key end

     0   :  { %s1887_s0 = inlined_call_operand.vmem [shape: f32[64,128], index: 0, kind: input, shape index: {}]   ;;  %s1888_s1 = inlined_call_operand.vmem [shape: f32[64,128], index: 1, kind: input, shape index: {}]   ;;  %s1889_s2 = inlined_call_operand.vmem [shape: f32[64,128], index: 2, kind: input, shape index: {}]   ;;  %s1890_s3 = inlined_call_operand.vmem [shape: f32[128,64], index: 3, kind: input, shape index: {}]   ;;  %s1891_s4 = inlined_call_operand.vmem [shape: f32[1,64], index: 4, kind: input, shape index: {}]   ;;  %s1892_s5 = inlined_call_operand.vmem [shape: f32[64,32], index: 5, kind: input, shape index: {}]   ;;  %s1893_s6 = inlined_call_operand.vmem [shape: f32[1,32], index: 6, kind: input, shape index: {}]   ;;  %s1894_s7 = inlined_call_operand.hbm [shape: f32[64,128], index: 7, kind: output, shape index: {}]  }
   0x1   :  { %v27_v0 = vld [vmem:[%s1890_s3] sm:$0xff]  ;;  %v28_v1 = vld [vmem:[%s1890_s3 + $0x8] sm:$0xff]  ;;  %v29_v2 = vld [vmem:[%s1890_s3 + $0x10] sm:$0xff] }
   0x2   :  { %v1119_v3 = vpack.c.bf16 %v28_v1, %v27_v0  ;;  %v30_v4 = vld [vmem:[%s1890_s3 + $0x18] sm:$0xff]  ;;  %v31_v6 = vld [vmem:[%s1890_s3 + $0x20] sm:$0xff]  ;;  %v32_v7 = vld [vmem:[%s1890_s3 + $0x28] sm:$0xff] }
   0x3   :  { %v1123_v5 = vpack.c.bf16 %v30_v4, %v29_v2  ;;  %v1127_v8 = vpack.c.bf16 %v32_v7, %v31_v6  ;;  %v53_v9 = vld [vmem:[%s1887_s0] sm:$0xff]  ;;  %v33_v10 = vld [vmem:[%s1890_s3 + $0x30] sm:$0xff]  ;;  %v34_v11 = vld [vmem:[%s1890_s3 + $0x38] sm:$0xff] }
   0x4   :  { %1120 = vmatprep.subr.bf16.mxu0 %v1119_v3  ;;  %1031 = vmatprep.mubr.f32.mxu0 %v53_v9  ;;  %v1131_v12 = vpack.c.bf16 %v34_v11, %v33_v10  ;;  %v35_v13 = vld [vmem:[%s1890_s3 + $0x40] sm:$0xff]  ;;  %v36_v14 = vld [vmem:[%s1890_s3 + $0x48] sm:$0xff] }
   0x5   :  { %1122 = vmatpush3.bf16.msra.mxu0 %v1119_v3  ;;  %v1135_v15 = vpack.c.bf16 %v36_v14, %v35_v13 }
   0x6   :  { %1124 = vmatprep.subr.bf16.mxu0 %v1123_v5 }
   0x9   :  { %1126 = vmatpush3.bf16.msra.mxu0 %v1123_v5 }
   0xa   :  { %1128 = vmatprep.subr.bf16.mxu0 %v1127_v8 }
   0xd   :  { %1130 = vmatpush3.bf16.msra.mxu0 %v1127_v8 }
   0xe   :  { %1132 = vmatprep.subr.bf16.mxu0 %v1131_v12 }
   0xf   :  { %12 = vsyncpa [#allocation3], 0  ;;  %v37_v16 = vld [vmem:[%s1890_s3 + $0x50] sm:$0xff]  ;;  %v38_v17 = vld [vmem:[%s1890_s3 + $0x58] sm:$0xff]  ;;  %vm292_vm0 = vcmask 523264   ;;  %vm604_vm1 = vcmask 261120  }
  0x10   :  { %v1139_v18 = vpack.c.bf16 %v38_v17, %v37_v16  ;;  %v39_v19 = vld [vmem:[%s1890_s3 + $0x60] sm:$0xff]  ;;  %v40_v20 = vld [vmem:[%s1890_s3 + $0x68] sm:$0xff]  ;;  %v41_v22 = vld [vmem:[%s1890_s3 + $0x70] sm:$0xff]  ;;  %s1373_s12 = smov [#allocation2]  }
  0x11   :  { %1134 = vmatpush3.bf16.msra.mxu0 %v1131_v12  ;;  %v1143_v21 = vpack.c.bf16 %v40_v20, %v39_v19  ;;  %v42_v23 = vld [vmem:[%s1890_s3 + $0x78] sm:$0xff]  ;;  %v54_v25 = vld [vmem:[%s1887_s0 + $0x8] sm:$0xff]  ;;  %v55_v26 = vld [vmem:[%s1887_s0 + $0x10] sm:$0xff]  ;;  %s890_s13 = sshll.u32 %s1373_s12, 4  ;;  %s891_s13 = int_to_ptr.vmem [resolvable:$true] %s890_s13 }
  0x12   :  { %1136 = vmatprep.subr.bf16.mxu0 %v1135_v15  ;;  %v1147_v24 = vpack.c.bf16 %v42_v23, %v41_v22  ;;  %v56_v27 = vld [vmem:[%s1887_s0 + $0x18] sm:$0xff]  ;;  %v57_v28 = vld [vmem:[%s1887_s0 + $0x20] sm:$0xff]  ;;  %v58_v29 = vld [vmem:[%s1887_s0 + $0x28] sm:$0xff]  ;;  %s1349_s16 = scalar_lea.vmem %s891_s13, 1024  ;;  %p1354_p1 = scmp.lt.s32.totalorder %s891_s13, %s891_s13 }
  0x13   :  { %v59_v30 = vld [vmem:[%s1887_s0 + $0x30] sm:$0xff]  ;;  %v60_v31 = vld [vmem:[%s1887_s0 + $0x38] sm:$0xff]  ;;  %v1491_v32 = vld [vmem:[%s1888_s1] sm:$0xff]  ;;  %p1350_p0 = scmp.ne.s32.totalorder %s891_s13, %s1349_s16  ;;  %p1355_p2 = scmp.lt.s32.totalorder %s1349_s16, %s1349_s16 }
  0x14   :  { %v1497_v33 = vld [vmem:[%s1888_s1 + $0x8] sm:$0xff]  ;;  %v63_v34 = vld [vmem:[%s1888_s1 + $0x10] sm:$0xff]  ;;  %v64_v35 = vld [vmem:[%s1888_s1 + $0x18] sm:$0xff] }
  0x15   :  { %1138 = vmatpush3.bf16.msra.mxu0 %v1135_v15  ;;  %v65_v36 = vld [vmem:[%s1888_s1 + $0x20] sm:$0xff]  ;;  %v66_v37 = vld [vmem:[%s1888_s1 + $0x28] sm:$0xff]  ;;  %v67_v38 = vld [vmem:[%s1888_s1 + $0x30] sm:$0xff]  ;;  %p1356_p3 = por %p1355_p2, %p1354_p1 }
  0x16   :  { %1140 = vmatprep.subr.bf16.mxu0 %v1139_v18  ;;  %v68_v39 = vld [vmem:[%s1888_s1 + $0x38] sm:$0xff]  ;;  %v1521_v40 = vld [vmem:[%s1889_s2] sm:$0xff]  ;;  %v1527_v41 = vld [vmem:[%s1889_s2 + $0x8] sm:$0xff] }
  0x17   :  { %v1532_v42 = vld [vmem:[%s1889_s2 + $0x10] sm:$0xff]  ;;  %v72_v43 = vld [vmem:[%s1889_s2 + $0x18] sm:$0xff]  ;;  %v73_v44 = vld [vmem:[%s1889_s2 + $0x20] sm:$0xff]  ;;  %p1357_p4 = pnand %p1356_p3, %p1350_p0 }
  0x18   :  { %v74_v45 = vld [vmem:[%s1889_s2 + $0x28] sm:$0xff]  ;;  %v75_v46 = vld [vmem:[%s1889_s2 + $0x30] sm:$0xff]  ;;  %v76_v47 = vld [vmem:[%s1889_s2 + $0x38] sm:$0xff] }
  0x19   :  { %1142 = vmatpush3.bf16.msra.mxu0 %v1139_v18  ;;  %v43_v48 = vld [vmem:[%s1892_s5] sm:$0xff]  ;;  %v44_v49 = vld [vmem:[%s1892_s5 + $0x8] sm:$0xff]  ;;  %v45_v51 = vld [vmem:[%s1892_s5 + $0x10] sm:$0xff] }
  0x1a   :  { %1144 = vmatprep.subr.bf16.mxu0 %v1143_v21  ;;  %v1151_v50 = vpack.c.bf16 %v44_v49, %v43_v48  ;;  %v46_v52 = vld [vmem:[%s1892_s5 + $0x18] sm:$0xff]  ;;  %v47_v54 = vld [vmem:[%s1892_s5 + $0x20] sm:$0xff]  ;;  %v48_v55 = vld [vmem:[%s1892_s5 + $0x28] sm:$0xff] }
  0x1b   :  { %v1155_v53 = vpack.c.bf16 %v46_v52, %v45_v51  ;;  %v1159_v56 = vpack.c.bf16 %v48_v55, %v47_v54  ;;  %v49_v57 = vld [vmem:[%s1892_s5 + $0x30] sm:$0xff]  ;;  %v50_v58 = vld [vmem:[%s1892_s5 + $0x38] sm:$0xff]  ;;  %v1578_v60 = vld [vmem:[%s1891_s4] ss:$0 sm:$0xff] }
  0x1c   :  { %1152 = vmatprep.subr.bf16.mxu1 %v1151_v50  ;;  %v1163_v59 = vpack.c.bf16 %v50_v58, %v49_v57 }
  0x1d   :  { %1146 = vmatpush3.bf16.msra.mxu0 %v1143_v21  ;;  %1154 = vmatpush3.bf16.msra.mxu1 %v1151_v50 }
  0x1e   :  { %1148 = vmatprep.subr.bf16.mxu0 %v1147_v24  ;;  %1156 = vmatprep.subr.bf16.mxu1 %v1155_v53 }
  0x21   :  { %1150 = vmatpush3.bf16.msra.mxu0 %v1147_v24  ;;  %1158 = vmatpush3.bf16.msra.mxu1 %v1155_v53 }
  0x22   :  { %1160 = vmatprep.subr.bf16.mxu1 %v1159_v56 }
  0x24   :  { %1032 = vmatmul.mubr.f32.vlgmr.msra.gmra.mrb[0].mxu0 %v54_v25 }
  0x25   :  { %1034 = vmatprep.mubr.f32.mxu0 %v55_v26  ;;  %1162 = vmatpush3.bf16.msra.mxu1 %v1159_v56 }
  0x26   :  { %1164 = vmatprep.subr.bf16.mxu1 %v1163_v59 }
  0x28   :  { %1035 = vmatmul.mubr.f32.gmra.mrb[2].mxu0 %v56_v27 }
  0x29   :  { %1037 = vmatprep.mubr.f32.mxu0 %v57_v28  ;;  %1166 = vmatpush3.bf16.msra.mxu1 %v1163_v59 }
  0x2c   :  { %1038 = vmatmul.mubr.f32.gmra.mrb[4].mxu0 %v58_v29 }
  0x2d   :  { %1040 = vmatprep.mubr.f32.mxu0 %v59_v30 }
  0x30   :  { %1041 = vmatmul.mubr.f32.gmra.mrb[6].mxu0 %v60_v31 }
  0x31   :  { %1043 = vmatprep.mubr.f32.mxu0 %v1491_v32 }
  0x34   :  { %1044 = vmatmul.mubr.f32.gmra.mrb[8].mxu0 %v1497_v33 }
  0x35   :  { %1046 = vmatprep.mubr.f32.mxu0 %v63_v34 }
  0x38   :  { %1047 = vmatmul.mubr.f32.gmra.mrb[10].mxu0 %v64_v35 }
  0x39   :  { %1049 = vmatprep.mubr.f32.mxu0 %v65_v36 }
  0x3c   :  { %1050 = vmatmul.mubr.f32.gmra.mrb[12].mxu0 %v66_v37 }
  0x3d   :  { %1052 = vmatprep.mubr.f32.mxu0 %v67_v38 }
  0x40   :  { %1053 = vmatmul.mubr.f32.gmra.mrb[14].mxu0 %v68_v39 }
  0x41   :  { %1055 = vmatprep.mubr.f32.mxu0 %v1521_v40 }
  0x44   :  { %1056 = vmatmul.mubr.f32.gmra.mrb[16].mxu0 %v1527_v41 }
  0x45   :  { %1058 = vmatprep.mubr.f32.mxu0 %v1532_v42 }
  0x48   :  { %1059 = vmatmul.mubr.f32.gmra.mrb[18].mxu0 %v72_v43 }
  0x49   :  { %1061 = vmatprep.mubr.f32.mxu0 %v73_v44 }
  0x4c   :  { %1062 = vmatmul.mubr.f32.gmra.mrb[20].mxu0 %v74_v45 }
  0x4d   :  { %1064 = vmatprep.mubr.f32.mxu0 %v75_v46 }
  0x50   :  { %1065 = vmatmul.mubr.f32.gmra.mrb[22].mxu0 %v76_v47 }
  0xf7   :  { %v1033_v61 = vpop.f32.mrb[0].mxu0 }
  0xf8   :  { %v155_v62 = vadd.f32 %v1033_v61, %v1578_v60  ;;  %v149_v63 = vpop.f32.mrb[1].mxu0 }
  0xf9   :  { %v150_v0 = vadd.f32 %v1578_v60, %v149_v63 }
  0xfb   :  { %1170 = vtanh.f32 %v150_v0  ;;  %v1036_v1 = vpop.f32.mrb[2].mxu0 }
  0xfc   :  { %1172 = vtanh.f32 %v155_v62  ;;  %v165_v2 = vadd.f32 %v1036_v1, %v1578_v60  ;;  %v159_v3 = vpop.f32.mrb[3].mxu0 }
  0xfd   :  { %v160_v4 = vadd.f32 %v1578_v60, %v159_v3 }
  0xff   :  { %1174 = vtanh.f32 %v160_v4  ;;  %v1039_v5 = vpop.f32.mrb[4].mxu0 }
 0x100   :  { %1176 = vtanh.f32 %v165_v2  ;;  %v175_v6 = vadd.f32 %v1039_v5, %v1578_v60  ;;  %v169_v7 = vpop.f32.mrb[5].mxu0 }
 0x101   :  { %v170_v8 = vadd.f32 %v1578_v60, %v169_v7 }
 0x102   :  { %1178 = vtanh.f32 %v175_v6 }
 0x103   :  { %1180 = vtanh.f32 %v170_v8  ;;  %v1042_v9 = vpop.f32.mrb[6].mxu0 }
 0x104   :  { %v185_v10 = vadd.f32 %v1042_v9, %v1578_v60  ;;  %v179_v11 = vpop.f32.mrb[7].mxu0 }
 0x105   :  { %v1171_v12 = vpop.eup %1170  ;;  %v180_v13 = vadd.f32 %v1578_v60, %v179_v11 }
 0x106   :  { %v1173_v14 = vpop.eup %1172  ;;  %1182 = vtanh.f32 %v185_v10  ;;  %1083 = vmatprep.mubr.msk.f32.mxu1 %vm292_vm0, %v1171_v12 }
 0x107   :  { %1184 = vtanh.f32 %v180_v13  ;;  %v1045_v15 = vpop.f32.mrb[8].mxu0  ;;  %1084 = vmatmul.mubr.msk.f32.vlgmr.msra.gmra.mrb[0].mxu1 %vm292_vm0, %v1173_v14 }
 0x108   :  { %v195_v16 = vadd.f32 %v1045_v15, %v1578_v60  ;;  %v189_v17 = vpop.f32.mrb[9].mxu0 }
 0x109   :  { %v1175_v18 = vpop.eup %1174  ;;  %v190_v19 = vadd.f32 %v1578_v60, %v189_v17 }
 0x10a   :  { %v1177_v20 = vpop.eup %1176  ;;  %1186 = vtanh.f32 %v195_v16  ;;  %1086 = vmatprep.mubr.msk.f32.mxu1 %vm292_vm0, %v1175_v18  ;;  %v1631_v16 = vld [vmem:[%s1893_s6] ss:$0 sm:$0xff] }
 0x10b   :  { %1188 = vtanh.f32 %v190_v19  ;;  %v1048_v21 = vpop.f32.mrb[10].mxu0  ;;  %1087 = vmatmul.mubr.msk.f32.gmra.mrb[2].mxu1 %vm292_vm0, %v1177_v20 }
 0x10c   :  { %v1179_v22 = vpop.eup %1178  ;;  %v205_v23 = vadd.f32 %v1048_v21, %v1578_v60  ;;  %v199_v24 = vpop.f32.mrb[11].mxu0 }
 0x10d   :  { %v1181_v25 = vpop.eup %1180  ;;  %v200_v26 = vadd.f32 %v1578_v60, %v199_v24 }
 0x10e   :  { %1190 = vtanh.f32 %v205_v23  ;;  %1089 = vmatprep.mubr.msk.f32.mxu1 %vm292_vm0, %v1181_v25 }
 0x10f   :  { %1192 = vtanh.f32 %v200_v26  ;;  %v1051_v27 = vpop.f32.mrb[12].mxu0  ;;  %1090 = vmatmul.mubr.msk.f32.gmra.mrb[4].mxu1 %vm292_vm0, %v1179_v22 }
 0x110   :  { %v1183_v28 = vpop.eup %1182  ;;  %v215_v29 = vadd.f32 %v1051_v27, %v1578_v60  ;;  %v209_v30 = vpop.f32.mrb[13].mxu0 }
 0x111   :  { %v1185_v31 = vpop.eup %1184  ;;  %v210_v34 = vadd.f32 %v1578_v60, %v209_v30 }
 0x112   :  { %1194 = vtanh.f32 %v215_v29  ;;  %1092 = vmatprep.mubr.msk.f32.mxu1 %vm292_vm0, %v1185_v31 }
 0x113   :  { %1196 = vtanh.f32 %v210_v34  ;;  %v1054_v35 = vpop.f32.mrb[14].mxu0  ;;  %1093 = vmatmul.mubr.msk.f32.gmra.mrb[6].mxu1 %vm292_vm0, %v1183_v28 }
 0x114   :  { %v1187_v36 = vpop.eup %1186  ;;  %v225_v37 = vadd.f32 %v1054_v35, %v1578_v60  ;;  %v219_v38 = vpop.f32.mrb[15].mxu0 }
 0x115   :  { %v1189_v39 = vpop.eup %1188  ;;  %v220_v43 = vadd.f32 %v1578_v60, %v219_v38 }
 0x116   :  { %1198 = vtanh.f32 %v225_v37  ;;  %1095 = vmatprep.mubr.msk.f32.mxu1 %vm292_vm0, %v1189_v39 }
 0x117   :  { %1200 = vtanh.f32 %v220_v43  ;;  %v1057_v44 = vpop.f32.mrb[16].mxu0  ;;  %1096 = vmatmul.mubr.msk.f32.gmra.mrb[8].mxu1 %vm292_vm0, %v1187_v36 }
 0x118   :  { %v1191_v45 = vpop.eup %1190  ;;  %v235_v46 = vadd.f32 %v1057_v44, %v1578_v60  ;;  %v229_v47 = vpop.f32.mrb[17].mxu0 }
 0x119   :  { %v1193_v48 = vpop.eup %1192  ;;  %v230_v49 = vadd.f32 %v1578_v60, %v229_v47 }
 0x11a   :  { %1202 = vtanh.f32 %v235_v46  ;;  %1098 = vmatprep.mubr.msk.f32.mxu1 %vm292_vm0, %v1193_v48 }
 0x11b   :  { %1204 = vtanh.f32 %v230_v49  ;;  %v1060_v50 = vpop.f32.mrb[18].mxu0  ;;  %1099 = vmatmul.mubr.msk.f32.gmra.mrb[10].mxu1 %vm292_vm0, %v1191_v45 }
 0x11c   :  { %v1195_v51 = vpop.eup %1194  ;;  %v245_v52 = vadd.f32 %v1060_v50, %v1578_v60  ;;  %v239_v53 = vpop.f32.mrb[19].mxu0 }
 0x11d   :  { %v1197_v54 = vpop.eup %1196  ;;  %v240_v55 = vadd.f32 %v1578_v60, %v239_v53 }
 0x11e   :  { %1206 = vtanh.f32 %v245_v52  ;;  %1101 = vmatprep.mubr.msk.f32.mxu1 %vm292_vm0, %v1197_v54 }
 0x11f   :  { %1208 = vtanh.f32 %v240_v55  ;;  %v1063_v56 = vpop.f32.mrb[20].mxu0  ;;  %1102 = vmatmul.mubr.msk.f32.gmra.mrb[12].mxu1 %vm292_vm0, %v1195_v51 }
 0x120   :  { %v1199_v57 = vpop.eup %1198  ;;  %v255_v58 = vadd.f32 %v1063_v56, %v1578_v60  ;;  %v249_v59 = vpop.f32.mrb[21].mxu0 }
 0x121   :  { %v1201_v61 = vpop.eup %1200  ;;  %v250_v62 = vadd.f32 %v1578_v60, %v249_v59 }
 0x122   :  { %1210 = vtanh.f32 %v255_v58  ;;  %1104 = vmatprep.mubr.msk.f32.mxu1 %vm292_vm0, %v1201_v61 }
 0x123   :  { %1212 = vtanh.f32 %v250_v62  ;;  %v1066_v63 = vpop.f32.mrb[22].mxu0  ;;  %1105 = vmatmul.mubr.msk.f32.gmra.mrb[14].mxu1 %vm292_vm0, %v1199_v57 }
 0x124   :  { %v1203_v0 = vpop.eup %1202  ;;  %v265_v1 = vadd.f32 %v1066_v63, %v1578_v60  ;;  %v259_v2 = vpop.f32.mrb[23].mxu0 }
 0x125   :  { %v1205_v3 = vpop.eup %1204  ;;  %v260_v4 = vadd.f32 %v1578_v60, %v259_v2 }
 0x126   :  { %1214 = vtanh.f32 %v265_v1  ;;  %1107 = vmatprep.mubr.msk.f32.mxu1 %vm292_vm0, %v1205_v3 }
 0x127   :  { %1216 = vtanh.f32 %v260_v4  ;;  %1108 = vmatmul.mubr.msk.f32.gmra.mrb[16].mxu1 %vm292_vm0, %v1203_v0 }
 0x128   :  { %v1207_v5 = vpop.eup %1206 }
 0x129   :  { %v1209_v6 = vpop.eup %1208 }
 0x12a   :  { %1110 = vmatprep.mubr.msk.f32.mxu1 %vm292_vm0, %v1209_v6 }
 0x12b   :  { %1111 = vmatmul.mubr.msk.f32.gmra.mrb[18].mxu1 %vm292_vm0, %v1207_v5 }
 0x12c   :  { %v1211_v7 = vpop.eup %1210 }
 0x12d   :  { %v1213_v8 = vpop.eup %1212 }
 0x12e   :  { %1113 = vmatprep.mubr.msk.f32.mxu1 %vm292_vm0, %v1213_v8 }
 0x12f   :  { %1114 = vmatmul.mubr.msk.f32.gmra.mrb[20].mxu1 %vm292_vm0, %v1211_v7 }
 0x130   :  { %v1215_v9 = vpop.eup %1214 }
 0x131   :  { %v1217_v60 = vpop.eup %1216 }
 0x132   :  { %1116 = vmatprep.mubr.msk.f32.mxu1 %vm292_vm0, %v1217_v60 }
 0x133   :  { %1117 = vmatmul.mubr.msk.f32.gmra.mrb[22].mxu1 %vm292_vm0, %v1215_v9 }
 0x1da   :  { %v1085_v10 = vpop.f32.mrb[0].mxu1 }
 0x1db   :  { %1218 = vtanh.f32 %v1085_v10  ;;  %v431_v11 = vpop.f32.mrb[1].mxu1 }
 0x1dc   :  { %1220 = vtanh.f32 %v431_v11 }
 0x1de   :  { %v1088_v12 = vpop.f32.mrb[2].mxu1 }
 0x1df   :  { %1222 = vtanh.f32 %v1088_v12  ;;  %v441_v13 = vpop.f32.mrb[3].mxu1 }
 0x1e0   :  { %1224 = vtanh.f32 %v441_v13 }
 0x1e2   :  { %v1091_v14 = vpop.f32.mrb[4].mxu1 }
 0x1e3   :  { %1226 = vtanh.f32 %v1091_v14  ;;  %v451_v15 = vpop.f32.mrb[5].mxu1 }
 0x1e4   :  { %1228 = vtanh.f32 %v451_v15 }
 0x1e5   :  { %v1219_v17 = vpop.eup %1218 }
 0x1e6   :  { %v1221_v18 = vpop.eup %1220  ;;  %v1094_v19 = vpop.f32.mrb[6].mxu1  ;;  %v581_v20 = vmul.f32 %v1219_v17, %v1631_v16 }
 0x1e7   :  { %1230 = vtanh.f32 %v1094_v19  ;;  %v461_v21 = vpop.f32.mrb[7].mxu1  ;;  %v580_v23 = vmul.f32 %v1221_v18, %v1631_v16 }
 0x1e8   :  { %1232 = vtanh.f32 %v461_v21  ;;  %v608_v22 = vsel %vm604_vm1, %v581_v20, 0.0 }
 0x1e9   :  { %v1223_v24 = vpop.eup %1222  ;;  %609 = vadd.xlane.f32.xlu0 %v608_v22  ;;  %v605_v29 = vsel %vm604_vm1, %v580_v23, 0.0 }
 0x1ea   :  { %v1225_v25 = vpop.eup %1224  ;;  %v1097_v26 = vpop.f32.mrb[8].mxu1  ;;  %v583_v27 = vmul.f32 %v1223_v24, %v1631_v16 }
 0x1eb   :  { %1234 = vtanh.f32 %v1097_v26  ;;  %v471_v28 = vpop.f32.mrb[9].mxu1  ;;  %v582_v31 = vmul.f32 %v1225_v25, %v1631_v16 }
 0x1ec   :  { %1236 = vtanh.f32 %v471_v28  ;;  %v614_v30 = vsel %vm604_vm1, %v583_v27, 0.0 }
 0x1ed   :  { %v1227_v34 = vpop.eup %1226  ;;  %606 = vadd.xlane.f32.xlu0 %v605_v29  ;;  %615 = vadd.xlane.f32.xlu1 %v614_v30  ;;  %v611_v39 = vsel %vm604_vm1, %v582_v31, 0.0 }
 0x1ee   :  { %v1229_v35 = vpop.eup %1228  ;;  %v1100_v36 = vpop.f32.mrb[10].mxu1  ;;  %v585_v43 = vmul.f32 %v1227_v34, %v1631_v16 }
 0x1ef   :  { %1238 = vtanh.f32 %v1100_v36  ;;  %v481_v37 = vpop.f32.mrb[11].mxu1  ;;  %v584_v38 = vmul.f32 %v1229_v35, %v1631_v16 }
 0x1f0   :  { %1240 = vtanh.f32 %v481_v37  ;;  %v620_v50 = vsel %vm604_vm1, %v585_v43, 0.0 }
 0x1f1   :  { %v1231_v44 = vpop.eup %1230  ;;  %612 = vadd.xlane.f32.xlu1 %v611_v39  ;;  %v617_v45 = vsel %vm604_vm1, %v584_v38, 0.0 }
 0x1f2   :  { %v1233_v46 = vpop.eup %1232  ;;  %618 = vadd.xlane.f32.xlu0 %v617_v45  ;;  %v1103_v47 = vpop.f32.mrb[12].mxu1  ;;  %v587_v51 = vmul.f32 %v1231_v44, %v1631_v16 }
 0x1f3   :  { %1242 = vtanh.f32 %v1103_v47  ;;  %v491_v48 = vpop.f32.mrb[13].mxu1  ;;  %v586_v49 = vmul.f32 %v1233_v46, %v1631_v16 }
 0x1f4   :  { %1244 = vtanh.f32 %v491_v48  ;;  %v626_v58 = vsel %vm604_vm1, %v587_v51, 0.0 }
 0x1f5   :  { %v1235_v52 = vpop.eup %1234  ;;  %621 = vadd.xlane.f32.xlu1 %v620_v50  ;;  %v623_v53 = vsel %vm604_vm1, %v586_v49, 0.0 }
 0x1f6   :  { %v1237_v54 = vpop.eup %1236  ;;  %624 = vadd.xlane.f32.xlu0 %v623_v53  ;;  %v1106_v55 = vpop.f32.mrb[14].mxu1  ;;  %v589_v59 = vmul.f32 %v1235_v52, %v1631_v16 }
 0x1f7   :  { %1246 = vtanh.f32 %v1106_v55  ;;  %v501_v56 = vpop.f32.mrb[15].mxu1  ;;  %v588_v57 = vmul.f32 %v1237_v54, %v1631_v16 }
 0x1f8   :  { %1248 = vtanh.f32 %v501_v56  ;;  %v632_v3 = vsel %vm604_vm1, %v589_v59, 0.0 }
 0x1f9   :  { %v1239_v61 = vpop.eup %1238  ;;  %627 = vadd.xlane.f32.xlu1 %v626_v58  ;;  %v629_v62 = vsel %vm604_vm1, %v588_v57, 0.0 }
 0x1fa   :  { %v1241_v63 = vpop.eup %1240  ;;  %630 = vadd.xlane.f32.xlu0 %v629_v62  ;;  %v1109_v0 = vpop.f32.mrb[16].mxu1  ;;  %v591_v4 = vmul.f32 %v1239_v61, %v1631_v16 }
 0x1fb   :  { %1250 = vtanh.f32 %v1109_v0  ;;  %v511_v1 = vpop.f32.mrb[17].mxu1  ;;  %v590_v2 = vmul.f32 %v1241_v63, %v1631_v16 }
 0x1fc   :  { %1252 = vtanh.f32 %v511_v1  ;;  %v638_v10 = vsel %vm604_vm1, %v591_v4, 0.0 }
 0x1fd   :  { %v1243_v5 = vpop.eup %1242  ;;  %633 = vadd.xlane.f32.xlu1 %v632_v3  ;;  %v635_v6 = vsel %vm604_vm1, %v590_v2, 0.0 }
 0x1fe   :  { %v1245_v7 = vpop.eup %1244  ;;  %636 = vadd.xlane.f32.xlu0 %v635_v6  ;;  %v1112_v8 = vpop.f32.mrb[18].mxu1  ;;  %v593_v11 = vmul.f32 %v1243_v5, %v1631_v16 }
 0x1ff   :  { %1254 = vtanh.f32 %v1112_v8  ;;  %v521_v9 = vpop.f32.mrb[19].mxu1  ;;  %v592_v60 = vmul.f32 %v1245_v7, %v1631_v16 }
 0x200   :  { %1256 = vtanh.f32 %v521_v9  ;;  %v644_v19 = vsel %vm604_vm1, %v593_v11, 0.0 }
 0x201   :  { %v1247_v12 = vpop.eup %1246  ;;  %639 = vadd.xlane.f32.xlu1 %v638_v10  ;;  %v641_v13 = vsel %vm604_vm1, %v592_v60, 0.0 }
 0x202   :  { %v1249_v14 = vpop.eup %1248  ;;  %642 = vadd.xlane.f32.xlu0 %v641_v13  ;;  %v1115_v15 = vpop.f32.mrb[20].mxu1  ;;  %v595_v20 = vmul.f32 %v1247_v12, %v1631_v16 }
 0x203   :  { %1258 = vtanh.f32 %v1115_v15  ;;  %v531_v17 = vpop.f32.mrb[21].mxu1  ;;  %v594_v18 = vmul.f32 %v1249_v14, %v1631_v16 }
 0x204   :  { %1260 = vtanh.f32 %v531_v17  ;;  %v650_v27 = vsel %vm604_vm1, %v595_v20, 0.0 }
 0x205   :  { %v1251_v21 = vpop.eup %1250  ;;  %645 = vadd.xlane.f32.xlu1 %v644_v19  ;;  %v647_v22 = vsel %vm604_vm1, %v594_v18, 0.0 }
 0x206   :  { %v1253_v23 = vpop.eup %1252  ;;  %648 = vadd.xlane.f32.xlu0 %v647_v22  ;;  %v1118_v24 = vpop.f32.mrb[22].mxu1  ;;  %v597_v28 = vmul.f32 %v1251_v21, %v1631_v16 }
 0x207   :  { %1262 = vtanh.f32 %v1118_v24  ;;  %v541_v25 = vpop.f32.mrb[23].mxu1  ;;  %v596_v26 = vmul.f32 %v1253_v23, %v1631_v16 }
 0x208   :  { %1264 = vtanh.f32 %v541_v25  ;;  %v656_v35 = vsel %vm604_vm1, %v597_v28, 0.0 }
 0x209   :  { %v1255_v29 = vpop.eup %1254  ;;  %651 = vadd.xlane.f32.xlu1 %v650_v27  ;;  %v653_v30 = vsel %vm604_vm1, %v596_v26, 0.0 }
 0x20a   :  { %v1257_v31 = vpop.eup %1256  ;;  %654 = vadd.xlane.f32.xlu0 %v653_v30  ;;  %v599_v36 = vmul.f32 %v1255_v29, %v1631_v16 }
 0x20b   :  { %v598_v34 = vmul.f32 %v1257_v31, %v1631_v16 }
 0x20c   :  { %v662_v44 = vsel %vm604_vm1, %v599_v36, 0.0 }
 0x20d   :  { %v1259_v37 = vpop.eup %1258  ;;  %657 = vadd.xlane.f32.xlu1 %v656_v35  ;;  %v659_v38 = vsel %vm604_vm1, %v598_v34, 0.0 }
 0x20e   :  { %v1261_v39 = vpop.eup %1260  ;;  %660 = vadd.xlane.f32.xlu0 %v659_v38  ;;  %v601_v45 = vmul.f32 %v1259_v37, %v1631_v16 }
 0x20f   :  { %v600_v43 = vmul.f32 %v1261_v39, %v1631_v16 }
 0x210   :  { %v668_v50 = vsel %vm604_vm1, %v601_v45, 0.0 }
 0x211   :  { %v1263_v46 = vpop.eup %1262  ;;  %663 = vadd.xlane.f32.xlu1 %v662_v44  ;;  %v665_v47 = vsel %vm604_vm1, %v600_v43, 0.0 }
 0x212   :  { %v1265_v48 = vpop.eup %1264  ;;  %666 = vadd.xlane.f32.xlu0 %v665_v47  ;;  %v603_v51 = vmul.f32 %v1263_v46, %v1631_v16 }
 0x213   :  { %v602_v49 = vmul.f32 %v1265_v48, %v1631_v16 }
 0x214   :  { %v674_v53 = vsel %vm604_vm1, %v603_v51, 0.0 }
 0x215   :  { %669 = vadd.xlane.f32.xlu1 %v668_v50  ;;  %v671_v52 = vsel %vm604_vm1, %v602_v49, 0.0 }
 0x216   :  { %672 = vadd.xlane.f32.xlu0 %v671_v52 }
 0x219   :  { %675 = vadd.xlane.f32.xlu1 %v674_v53 }
 0x276   :  { %v610_v54 = vpop.xlane.xlu0 %609 }
 0x27a   :  { %v607_v55 = vpop.xlane.xlu0 %606  ;;  %v1681_v56 = vpop.xlane.xlu1 %615 }
 0x27e   :  { %v613_v57 = vpop.xlane.xlu1 %612 }
 0x27f   :  { %v1683_v58 = vpop.xlane.xlu0 %618 }
 0x282   :  { %v1685_v59 = vpop.xlane.xlu1 %621 }
 0x283   :  { %v1687_v61 = vpop.xlane.xlu0 %624 }
 0x286   :  { %v1689_v62 = vpop.xlane.xlu1 %627 }
 0x287   :  { %v631_v16 = vpop.xlane.xlu0 %630 }
 0x288   :  { %v677_v5 = vmax.f32 %v607_v55, %v631_v16 }
 0x28a   :  { %v634_v63 = vpop.xlane.xlu1 %633 }
 0x28b   :  { %v637_v0 = vpop.xlane.xlu0 %636  ;;  %v678_v9 = vmax.f32 %v610_v54, %v634_v63 }
 0x28c   :  { %v679_v60 = vmax.f32 %v613_v57, %v637_v0 }
 0x28e   :  { %v640_v1 = vpop.xlane.xlu1 %639 }
 0x28f   :  { %v643_v2 = vpop.xlane.xlu0 %642  ;;  %v680_v14 = vmax.f32 %v1681_v56, %v640_v1 }
 0x290   :  { %v681_v22 = vmax.f32 %v1683_v58, %v643_v2 }
 0x292   :  { %v1691_v3 = vpop.xlane.xlu1 %645 }
 0x293   :  { %v1693_v4 = vpop.xlane.xlu0 %648  ;;  %v682_v43 = vmax.f32 %v1685_v59, %v1691_v3 }
 0x294   :  { %v683_v44 = vmax.f32 %v1687_v61, %v1693_v4 }
 0x296   :  { %v1695_v6 = vpop.xlane.xlu1 %651 }
 0x297   :  { %v655_v7 = vpop.xlane.xlu0 %654 }
 0x298   :  { %v685_v8 = vmax.f32 %v677_v5, %v655_v7 }
 0x29a   :  { %v693_v10 = vsub.f32 %v607_v55, %v685_v8  ;;  %v717_v11 = vsub.f32 %v631_v16, %v685_v8  ;;  %v741_v12 = vsub.f32 %v655_v7, %v685_v8  ;;  %v658_v13 = vpop.xlane.xlu1 %657 }
 0x29b   :  { %v686_v15 = vmax.f32 %v678_v9, %v658_v13  ;;  %v661_v17 = vpop.xlane.xlu0 %660 }
 0x29c   :  { %v701_v18 = vmul.f32 1.442695, %v693_v10  ;;  %v725_v19 = vmul.f32 1.442695, %v717_v11  ;;  %v749_v20 = vmul.f32 1.442695, %v741_v12  ;;  %v687_v21 = vmax.f32 %v679_v60, %v661_v17 }
 0x29d   :  { %v694_v23 = vsub.f32 %v610_v54, %v686_v15  ;;  %v718_v24 = vsub.f32 %v634_v63, %v686_v15  ;;  %v742_v25 = vsub.f32 %v658_v13, %v686_v15 }
 0x29e   :  { %1266 = vpow2.f32 %v701_v18  ;;  %v695_v26 = vsub.f32 %v613_v57, %v687_v21  ;;  %v719_v27 = vsub.f32 %v637_v0, %v687_v21  ;;  %v743_v28 = vsub.f32 %v661_v17, %v687_v21  ;;  %v664_v29 = vpop.xlane.xlu1 %663 }
 0x29f   :  { %1268 = vpow2.f32 %v725_v19  ;;  %v703_v30 = vmul.f32 1.442695, %v694_v23  ;;  %v727_v31 = vmul.f32 1.442695, %v718_v24  ;;  %v751_v34 = vmul.f32 1.442695, %v742_v25  ;;  %v667_v35 = vpop.xlane.xlu0 %666 }
 0x2a0   :  { %1270 = vpow2.f32 %v749_v20  ;;  %v705_v36 = vmul.f32 1.442695, %v695_v26  ;;  %v729_v37 = vmul.f32 1.442695, %v719_v27  ;;  %v688_v38 = vmax.f32 %v680_v14, %v664_v29 }
 0x2a1   :  { %1272 = vpow2.f32 %v703_v30  ;;  %v689_v39 = vmax.f32 %v681_v22, %v667_v35  ;;  %v753_v45 = vmul.f32 1.442695, %v743_v28 }
 0x2a2   :  { %1274 = vpow2.f32 %v727_v31  ;;  %v670_v46 = vpop.xlane.xlu1 %669  ;;  %v696_v47 = vsub.f32 %v1681_v56, %v688_v38  ;;  %v720_v48 = vsub.f32 %v640_v1, %v688_v38  ;;  %v744_v49 = vsub.f32 %v664_v29, %v688_v38 }
 0x2a3   :  { %1276 = vpow2.f32 %v751_v34  ;;  %v697_v50 = vsub.f32 %v1683_v58, %v689_v39  ;;  %v721_v51 = vsub.f32 %v643_v2, %v689_v39  ;;  %v745_v52 = vsub.f32 %v667_v35, %v689_v39  ;;  %v673_v53 = vpop.xlane.xlu0 %672 }
 0x2a4   :  { %1278 = vpow2.f32 %v705_v36  ;;  %v707_v54 = vmul.f32 1.442695, %v696_v47  ;;  %v731_v55 = vmul.f32 1.442695, %v720_v48  ;;  %v755_v57 = vmul.f32 1.442695, %v744_v49 }
 0x2a5   :  { %1280 = vpow2.f32 %v729_v37  ;;  %v709_v16 = vmul.f32 1.442695, %v697_v50  ;;  %v733_v63 = vmul.f32 1.442695, %v721_v51  ;;  %v690_v0 = vmax.f32 %v682_v43, %v670_v46 }
 0x2a6   :  { %1282 = vpow2.f32 %v753_v45  ;;  %v691_v5 = vmax.f32 %v683_v44, %v673_v53  ;;  %v676_v7 = vpop.xlane.xlu1 %675  ;;  %v684_v1 = vmax.f32 %v1689_v62, %v1695_v6  ;;  %v757_v58 = vmul.f32 1.442695, %v745_v52 }
 0x2a7   :  { %1284 = vpow2.f32 %v707_v54  ;;  %v698_v8 = vsub.f32 %v1685_v59, %v690_v0  ;;  %v722_v9 = vsub.f32 %v1691_v3, %v690_v0  ;;  %v746_v60 = vsub.f32 %v670_v46, %v690_v0 }
 0x2a8   :  { %v1705_v56 = vpop.eup %1266  ;;  %1286 = vpow2.f32 %v731_v55  ;;  %v699_v12 = vsub.f32 %v1687_v61, %v691_v5  ;;  %v692_v13 = vmax.f32 %v684_v1, %v676_v7  ;;  %v723_v18 = vsub.f32 %v1693_v4, %v691_v5 }
 0x2a9   :  { %v1709_v2 = vpop.eup %1268  ;;  %1288 = vpow2.f32 %v755_v57  ;;  %v711_v15 = vmul.f32 1.442695, %v698_v8  ;;  %v735_v17 = vmul.f32 1.442695, %v722_v9  ;;  %v759_v19 = vmul.f32 1.442695, %v746_v60 }
 0x2aa   :  { %v1713_v10 = vpop.eup %1270  ;;  %v765_v11 = vadd.f32 %v1709_v2, %v1705_v56  ;;  %1290 = vpow2.f32 %v709_v16  ;;  %v747_v61 = vsub.f32 %v673_v53, %v691_v5  ;;  %v713_v23 = vmul.f32 1.442695, %v699_v12 }
 0x2ab   :  { %v1718_v14 = vpop.eup %1272  ;;  %1292 = vpow2.f32 %v733_v63  ;;  %v700_v24 = vsub.f32 %v1689_v62, %v692_v13  ;;  %v737_v26 = vmul.f32 1.442695, %v723_v18  ;;  %v724_v29 = vsub.f32 %v1695_v6, %v692_v13 }
 0x2ac   :  { %v1721_v59 = vpop.eup %1274  ;;  %v773_v3 = vadd.f32 %v1713_v10, %v765_v11  ;;  %1294 = vpow2.f32 %v757_v58  ;;  %v761_v31 = vmul.f32 1.442695, %v747_v61  ;;  %v748_v38 = vsub.f32 %v676_v7, %v692_v13 }
 0x2ad   :  { %v1724_v20 = vpop.eup %1276  ;;  %v766_v21 = vadd.f32 %v1721_v59, %v1718_v14  ;;  %1296 = vpow2.f32 %v711_v15  ;;  %v715_v35 = vmul.f32 1.442695, %v700_v24  ;;  %v739_v6 = vmul.f32 1.442695, %v724_v29 }
 0x2ae   :  { %v1728_v22 = vpop.eup %1278  ;;  %1298 = vrcp.f32 %v773_v3  ;;  %v763_v48 = vmul.f32 1.442695, %v748_v38 }
 0x2af   :  { %v1731_v4 = vpop.eup %1280  ;;  %v774_v25 = vadd.f32 %v1724_v20, %v766_v21  ;;  %1300 = vpow2.f32 %v735_v17 }
 0x2b0   :  { %v1734_v27 = vpop.eup %1282  ;;  %v767_v28 = vadd.f32 %v1731_v4, %v1728_v22  ;;  %1302 = vpow2.f32 %v759_v19  ;;  %v1330_v19 = vld [vmem:[%s1887_s0] sm:$0xff] }
 0x2b1   :  { %v1739_v30 = vpop.eup %1284  ;;  %1304 = vrcp.f32 %v774_v25 }
 0x2b2   :  { %v1741_v34 = vpop.eup %1286  ;;  %v775_v62 = vadd.f32 %v1734_v27, %v767_v28  ;;  %1306 = vpow2.f32 %v713_v23 }
 0x2b3   :  { %v1744_v36 = vpop.eup %1288  ;;  %v768_v37 = vadd.f32 %v1741_v34, %v1739_v30  ;;  %1308 = vpow2.f32 %v737_v26 }
 0x2b4   :  { %v1748_v39 = vpop.eup %1290  ;;  %1310 = vrcp.f32 %v775_v62 }
 0x2b5   :  { %v1750_v43 = vpop.eup %1292  ;;  %v776_v44 = vadd.f32 %v1744_v36, %v768_v37  ;;  %1312 = vpow2.f32 %v761_v31 }
 0x2b6   :  { %v1753_v45 = vpop.eup %1294  ;;  %v769_v46 = vadd.f32 %v1750_v43, %v1748_v39  ;;  %1314 = vpow2.f32 %v715_v35 }
 0x2b7   :  { %v1757_v47 = vpop.eup %1296  ;;  %1316 = vrcp.f32 %v776_v44 }
 0x2b8   :  { %v1299_v49 = vpop.eup %1298  ;;  %v777_v50 = vadd.f32 %v1753_v45, %v769_v46  ;;  %1318 = vpow2.f32 %v739_v6 }
 0x2b9   :  { %v1760_v51 = vpop.eup %1300  ;;  %v789_v52 = vmul.f32 %v1299_v49, %v773_v3 }
 0x2ba   :  { %v1762_v53 = vpop.eup %1302  ;;  %1320 = vrcp.f32 %v777_v50  ;;  %v770_v54 = vadd.f32 %v1760_v51, %v1757_v47 }
 0x2bb   :  { %v1305_v55 = vpop.eup %1304  ;;  %v797_v57 = vsub.f32 2.0, %v789_v52  ;;  %1322 = vpow2.f32 %v763_v48 }
 0x2bc   :  { %v1766_v16 = vpop.eup %1306  ;;  %v790_v63 = vmul.f32 %v1305_v55, %v774_v25  ;;  %v778_v0 = vadd.f32 %v1762_v53, %v770_v54  ;;  %v1333_v54 = vld [vmem:[%s1888_s1 + $0x10] sm:$0xff] }
 0x2bd   :  { %v1769_v5 = vpop.eup %1308  ;;  %v805_v7 = vmul.f32 %v1299_v49, %v797_v57 }
 0x2be   :  { %v1311_v1 = vpop.eup %1310  ;;  %v798_v58 = vsub.f32 2.0, %v790_v63  ;;  %1324 = vrcp.f32 %v778_v0  ;;  %v771_v8 = vadd.f32 %v1769_v5, %v1766_v16 }
 0x2bf   :  { %v1773_v9 = vpop.eup %1312  ;;  %v813_v60 = vmul.f32 %v1705_v56, %v805_v7  ;;  %v829_v11 = vmul.f32 %v1709_v2, %v805_v7  ;;  %v853_v12 = vmul.f32 %v1713_v10, %v805_v7  ;;  %v791_v13 = vmul.f32 %v1311_v1, %v775_v62 }
 0x2c0   :  { %v1778_v15 = vpop.eup %1314  ;;  %v806_v17 = vmul.f32 %v1305_v55, %v798_v58  ;;  %v1781_v18 = vadd.f32 %v1773_v9, %v771_v8  ;;  %v1334_v8 = vld [vmem:[%s1887_s0 + $0x18] sm:$0xff] }
 0x2c1   :  { %v1317_v3 = vpop.eup %1316  ;;  %v821_v21 = vmul.f32 %v1330_v19, %v813_v60  ;;  %v837_v61 = vmul.f32 %v829_v11, %v1491_v32  ;;  %v861_v56 = vmul.f32 %v853_v12, %v1521_v40  ;;  %v799_v2 = vsub.f32 2.0, %v791_v13  ;;  %v1331_v40 = vld [vmem:[%s1887_s0 + $0x8] sm:$0xff] }
 0x2c2   :  { %v1788_v23 = vpop.eup %1318  ;;  %v814_v10 = vmul.f32 %v1718_v14, %v806_v17  ;;  %v830_v24 = vmul.f32 %v1721_v59, %v806_v17  ;;  %v854_v25 = vmul.f32 %v1724_v20, %v806_v17  ;;  %v792_v26 = vmul.f32 %v1317_v3, %v776_v44 }
 0x2c3   :  { %v845_v28 = vadd.f32 %v837_v61, %v821_v21  ;;  %v807_v29 = vmul.f32 %v1311_v1, %v799_v2  ;;  %1326 = vrcp.f32 %v1781_v18  ;;  %v772_v31 = vadd.f32 %v1788_v23, %v1778_v15 }
 0x2c4   :  { %v1321_v32 = vpop.eup %1320  ;;  %v822_v62 = vmul.f32 %v1331_v40, %v814_v10  ;;  %v838_v14 = vmul.f32 %v830_v24, %v1497_v33  ;;  %v862_v59 = vmul.f32 %v854_v25, %v1527_v41  ;;  %v800_v35 = vsub.f32 2.0, %v792_v26  ;;  %v1332_v33 = vld [vmem:[%s1887_s0 + $0x10] sm:$0xff]  ;;  %v1337_v10 = vld [vmem:[%s1887_s0 + $0x20] sm:$0xff] }
 0x2c5   :  { %v1801_v20 = vpop.eup %1322  ;;  %v869_v37 = vadd.f32 %v861_v56, %v845_v28  ;;  %v815_v38 = vmul.f32 %v1728_v22, %v807_v29  ;;  %v831_v6 = vmul.f32 %v1731_v4, %v807_v29  ;;  %v855_v44 = vmul.f32 %v1734_v27, %v807_v29  ;;  %v1338_v25 = vld [vmem:[%s1888_s1 + $0x20] sm:$0xff] }
 0x2c6   :  { %v846_v46 = vadd.f32 %v838_v14, %v822_v62  ;;  %v808_v48 = vmul.f32 %v1317_v3, %v800_v35  ;;  %v793_v49 = vmul.f32 %v1321_v32, %v777_v50  ;;  %v780_v52 = vadd.f32 %v1801_v20, %v772_v31 }
 0x2c7   :  { %877 = vst [vmem:[#allocation2] sm:$0xff] %v869_v37  ;;  %v823_v41 = vmul.f32 %v1332_v33, %v815_v38  ;;  %v839_v22 = vmul.f32 %v1333_v54, %v831_v6  ;;  %v863_v4 = vmul.f32 %v855_v44, %v1532_v42  ;;  %v1335_v42 = vld [vmem:[%s1888_s1 + $0x18] sm:$0xff] }
 0x2c8   :  { %v1325_v55 = vpop.eup %1324  ;;  %v870_v27 = vadd.f32 %v862_v59, %v846_v46  ;;  %v816_v57 = vmul.f32 %v1739_v30, %v808_v48  ;;  %v832_v50 = vmul.f32 %v1741_v34, %v808_v48  ;;  %v856_v63 = vmul.f32 %v1744_v36, %v808_v48  ;;  %v1336_v36 = vld [vmem:[%s1889_s2 + $0x18] sm:$0xff]  ;;  %v1342_v59 = vld [vmem:[%s1889_s2 + $0x28] sm:$0xff] }
 0x2c9   :  { %v847_v7 = vadd.f32 %v839_v22, %v823_v41  ;;  %v801_v1 = vsub.f32 2.0, %v793_v49  ;;  %v794_v58 = vmul.f32 %v1325_v55, %v778_v0  ;;  %1328 = vrcp.f32 %v780_v52  ;;  %v1343_v49 = vld [vmem:[%s1887_s0 + $0x30] sm:$0xff] }
 0x2ca   :  { %878 = vst [vmem:[#allocation2 + $0x8] sm:$0xff] %v870_v27  ;;  %v824_v60 = vmul.f32 %v1334_v8, %v816_v57  ;;  %v840_v11 = vmul.f32 %v1335_v42, %v832_v50  ;;  %v864_v0 = vmul.f32 %v1336_v36, %v856_v63  ;;  %v1344_v41 = vld [vmem:[%s1888_s1 + $0x30] sm:$0xff]  ;;  %v1346_v50 = vld [vmem:[%s1887_s0 + $0x38] sm:$0xff] }
 0x2cb   :  { %v871_v30 = vadd.f32 %v863_v4, %v847_v7  ;;  %v809_v12 = vmul.f32 %v1321_v32, %v801_v1  ;;  %v802_v34 = vsub.f32 2.0, %v794_v58  ;;  %v1340_v32 = vld [vmem:[%s1887_s0 + $0x28] sm:$0xff]  ;;  %v1347_v7 = vld [vmem:[%s1888_s1 + $0x38] sm:$0xff] }
 0x2cc   :  { %v848_v13 = vadd.f32 %v840_v11, %v824_v60 }
 0x2cd   :  { %v1327_v17 = vpop.eup %1326  ;;  %879 = vst [vmem:[#allocation2 + $0x10] sm:$0xff] %v871_v30  ;;  %v817_v3 = vmul.f32 %v1748_v39, %v809_v12  ;;  %v833_v19 = vmul.f32 %v1750_v43, %v809_v12  ;;  %v857_v21 = vmul.f32 %v1753_v45, %v809_v12  ;;  %v810_v61 = vmul.f32 %v1325_v55, %v802_v34 }
 0x2ce   :  { %v872_v56 = vadd.f32 %v864_v0, %v848_v13  ;;  %v795_v2 = vmul.f32 %v1327_v17, %v1781_v18  ;;  %v1339_v18 = vld [vmem:[%s1889_s2 + $0x20] sm:$0xff] }
 0x2cf   :  { %v825_v24 = vmul.f32 %v1337_v10, %v817_v3  ;;  %v841_v26 = vmul.f32 %v1338_v25, %v833_v19  ;;  %v818_v39 = vmul.f32 %v1757_v47, %v810_v61  ;;  %v834_v43 = vmul.f32 %v1760_v51, %v810_v61  ;;  %v1341_v47 = vld [vmem:[%s1888_s1 + $0x28] sm:$0xff] }
 0x2d0   :  { %880 = vst [vmem:[#allocation2 + $0x18] sm:$0xff] %v872_v56  ;;  %v858_v45 = vmul.f32 %v1762_v53, %v810_v61  ;;  %v803_v28 = vsub.f32 2.0, %v795_v2  ;;  %v865_v31 = vmul.f32 %v1339_v18, %v857_v21 }
 0x2d1   :  { %v849_v29 = vadd.f32 %v841_v26, %v825_v24  ;;  %v826_v40 = vmul.f32 %v1340_v32, %v818_v39  ;;  %v842_v62 = vmul.f32 %v1341_v47, %v834_v43 }
 0x2d2   :  { %v811_v51 = vmul.f32 %v1327_v17, %v803_v28  ;;  %v866_v35 = vmul.f32 %v1342_v59, %v858_v45 }
 0x2d3   :  { %v1329_v14 = vpop.eup %1328  ;;  %v873_v53 = vadd.f32 %v865_v31, %v849_v29  ;;  %v850_v37 = vadd.f32 %v842_v62, %v826_v40 }
 0x2d4   :  { %v819_v38 = vmul.f32 %v1766_v16, %v811_v51  ;;  %v835_v6 = vmul.f32 %v1769_v5, %v811_v51  ;;  %v859_v44 = vmul.f32 %v1773_v9, %v811_v51  ;;  %v796_v46 = vmul.f32 %v1329_v14, %v780_v52  ;;  %v1345_v5 = vld [vmem:[%s1889_s2 + $0x30] sm:$0xff] }
 0x2d5   :  { %881 = vst [vmem:[#allocation2 + $0x20] sm:$0xff] %v873_v53  ;;  %v874_v48 = vadd.f32 %v866_v35, %v850_v37 }
 0x2d6   :  { %v827_v33 = vmul.f32 %v1343_v49, %v819_v38  ;;  %v843_v54 = vmul.f32 %v1344_v41, %v835_v6  ;;  %v804_v22 = vsub.f32 2.0, %v796_v46  ;;  %v867_v9 = vmul.f32 %v1345_v5, %v859_v44 }
 0x2d7   :  { %882 = vst [vmem:[#allocation2 + $0x28] sm:$0xff] %v874_v48 }
 0x2d8   :  { %v851_v16 = vadd.f32 %v843_v54, %v827_v33  ;;  %v812_v52 = vmul.f32 %v1329_v14, %v804_v22 }
 0x2da   :  { %v875_v4 = vadd.f32 %v867_v9, %v851_v16  ;;  %v820_v55 = vmul.f32 %v1778_v15, %v812_v52  ;;  %v836_v27 = vmul.f32 %v1788_v23, %v812_v52  ;;  %v860_v57 = vmul.f32 %v1801_v20, %v812_v52  ;;  %v1348_v15 = vld [vmem:[%s1889_s2 + $0x38] sm:$0xff] }
 0x2dc   :  { %883 = vst [vmem:[#allocation2 + $0x30] sm:$0xff] %v875_v4  ;;  %v828_v63 = vmul.f32 %v1346_v50, %v820_v55  ;;  %v844_v1 = vmul.f32 %v1347_v7, %v836_v27  ;;  %v868_v23 = vmul.f32 %v1348_v15, %v860_v57 }
 0x2de   :  { %v852_v58 = vadd.f32 %v844_v1, %v828_v63 }
 0x2e0   :  { %v876_v20 = vadd.f32 %v868_v23, %v852_v58 }
 0x2e2   :  { %884 = vst [vmem:[#allocation2 + $0x38] sm:$0xff] %v876_v20 }
 0x2e3   :  { %1360 = shalt.err (!%p1357_p4)
}
 0x2e4   :  { %s1361_s17 = scalar_lea.hbm %s1894_s7, 1024 }
 0x2e5   :  { %p1362_p5 = scmp.ne.s32.totalorder %s1894_s7, %s1361_s17  ;;  %p1365_p6 = scmp.lt.u32.totalorder %s1361_s17, %s1894_s7 }
 0x2e7   :  { %p1367_p7 = pnand %p1365_p6, %p1362_p5 }
 0x2e9   :  { %1370 = shalt.err (!%p1367_p7)
}
 0x2ea   :  { %s1374_s20 = smov 128   ;;  %s1375_s21 = smov 8  }
 0x2eb   :  { %896 = dma.vmem_to_hbm [thread:$0]  %s891_s13, 1024, %s1894_s7, [#allocation3], %s1374_s20, %s1374_s20, %s1375_s21  }
 0x2ec   :  { %1371 = dma.done.wait [#allocation3], 1024  }
 0x2ed   :  { %1372 = vsyncadd [#allocation3], 4294966272 }
 0x2ee   :  { %900 = vsyncpa [#allocation3], 1 }

</bundles_post_ra>
